<compile_context>
chip_gen: v6e
topology: v6e:2x2x1
jax: 0.10.0
libtpu: 0.0.40
codegen_flags: <defaults>
</compile_context>

<pallas_src>
import math
from functools import partial

import jax
import jax.numpy as jnp
from jax.experimental import pallas as pl
from jax.experimental.pallas import tpu as pltpu


def ffn_kernel(x_ref, w1_ref, w2_ref, g_ref, b_ref, out_ref, *scratch, eps):
    """Grid = (row_tiles, d_ff_tiles).  The second axis is a reduction over d_ff:
    partial W2 products accumulate into out_ref (f32 output) or a dedicated f32
    scratch (non-f32 output); residual + fused-stats LayerNorm run on the last
    f step."""
    acc_ref = scratch[0] if scratch else out_ref
    f = pl.program_id(1)
    n_f = pl.num_programs(1)

    @pl.when(f == 0)
    def _():
        acc_ref[...] = jnp.zeros_like(acc_ref)

    x = x_ref[...]                                                     # [tm, D] f32 (resident over f)
    xc = x.astype(w1_ref.dtype)                                        # in-kernel cast to MXU dtype
    h = jnp.dot(xc, w1_ref[...], preferred_element_type=jnp.float32)   # [tm, tf] f32 accum
    h = jnp.maximum(h, 0.0).astype(w2_ref.dtype)                       # ReLU -> MXU dtype
    acc_ref[...] += jnp.dot(h, w2_ref[...],
                            preferred_element_type=jnp.float32)        # [tm, D] f32 accum

    @pl.when(f == n_f - 1)
    def _():
        z = x.astype(jnp.float32) + acc_ref[...]                       # residual on original f32 x
        inv_d = 1.0 / z.shape[-1]
        s1 = jnp.sum(z, axis=-1, keepdims=True)                        # fused one-pass LN stats
        s2 = jnp.sum(z * z, axis=-1, keepdims=True)
        mu = s1 * inv_d
        var = jnp.maximum(s2 * inv_d - mu * mu, 0.0)                   # clamp cancellation
        inv = jax.lax.rsqrt(var + eps)
        out_ref[...] = ((z - mu) * inv * g_ref[0] + b_ref[0]).astype(out_ref.dtype)


def _round_up(x, m):
    return (x + m - 1) // m * m


def _vmem_capacity_bytes(default=64 * 1024 * 1024):
    """Physical VMEM of the current chip (128 MiB v5e/v6e, 64 MiB v7x)."""
    try:
        info = pltpu.get_tpu_info()
        for attr in ("vmem_capacity_bytes", "vmem_size_bytes", "vmem_bytes"):
            v = getattr(info, attr, None)
            if v:
                return int(v)
    except Exception:
        pass
    return default  # conservative: fits every generation


def positionwise_ffn(x, params, *, eps=1e-5, compute_dtype=jnp.bfloat16,
                     out_dtype=None, row_tile=512, vmem_budget_bytes=None):
    """x: [B, S, D] -> [B, S, D] = LayerNorm(x + relu(x @ w1) @ w2).

    params: w1 [D, d_ff], w2 [d_ff, D], g [1, D], b [1, D] (all f32, PyTorch layout).
    Matmuls run in `compute_dtype` (bf16 default) with f32 accumulation; the
    residual uses the original x and LayerNorm runs in f32.
    """
    B, S, D = x.shape
    d_ff = params["w1"].shape[1]
    M = B * S
    out_dtype = x.dtype if out_dtype is None else jnp.dtype(out_dtype)

    xbytes = jnp.dtype(x.dtype).itemsize
    wbytes = jnp.dtype(compute_dtype).itemsize
    obytes = jnp.dtype(out_dtype).itemsize

    # --- generation-aware VMEM budget ---
    vmem_cap = _vmem_capacity_bytes()
    budget = int(vmem_cap * 0.80) if vmem_budget_bytes is None else int(vmem_budget_bytes)
    vmem_limit = int(vmem_cap * 0.85)

    def tiles_bytes(tm, tf, n_f):
        v = 2 * tm * D * xbytes                 # x tile (double-buffered)
        v += 2 * tm * D * obytes                # out tile (double-buffered)
        v += 2 * D * tf * wbytes                # W1 block
        v += 2 * tf * D * wbytes                # W2 block
        v += tm * tf * (4 + wbytes)             # hidden activation (f32 + cast copy)
        if n_f > 1:
            v += tm * D * 4                     # worst-case f32 accumulator
        return v

    # --- row tile: as big as the budget allows, 16-aligned ---
    tm = min(_round_up(row_tile, 16), _round_up(M, 16))
    # Keep >= 2 row tiles when M allows, so the "parallel" axis shards across
    # both TensorCores on v7x.
    if M >= 32 and _round_up(M, tm) // tm < 2:
        tm = _round_up(-(-M // 2), 16)
    while tm > 16 and tiles_bytes(tm, min(d_ff, 512), 2) > budget:
        tm = max(16, _round_up(tm // 2, 16))
    M_pad = _round_up(M, tm)

    # --- d_ff tile: keep W1/W2 fully resident when they fit, else exact divisor ---
    if tiles_bytes(tm, d_ff, 1) <= budget:
        tf, dff_pad = d_ff, d_ff                # resident weights: constant index_map,
    else:                                       # no re-DMA across row tiles
        tf, dff_pad = 0, d_ff
        for base in (256, 128):                 # exact divisor -> no per-call weight pad
            t = base
            while t <= d_ff:
                if d_ff % t == 0 and tiles_bytes(tm, t, 2) <= budget:
                    tf = max(tf, t)
                t += base
            if tf:
                break
        if tf == 0:                             # last resort: pad d_ff to a small tile
            tf = 512
            while tf > 128 and tiles_bytes(tm, tf, 2) > budget:
                tf //= 2
            dff_pad = _round_up(d_ff, tf)

    # --- prepare operands (x stays in its original dtype; weights cast once here) ---
    xm = x.reshape(M, D)
    if M_pad != M:
        xm = jnp.pad(xm, ((0, M_pad - M), (0, 0)))
    w1 = params["w1"].astype(compute_dtype)     # no-op if weights are stored pre-cast
    w2 = params["w2"].astype(compute_dtype)
    if dff_pad != d_ff:
        w1 = jnp.pad(w1, ((0, 0), (0, dff_pad - d_ff)))
        w2 = jnp.pad(w2, ((0, dff_pad - d_ff), (0, 0)))
    gamma = params["g"].astype(jnp.float32)
    beta = params["b"].astype(jnp.float32)

    n_f = dff_pad // tf
    grid = (M_pad // tm, n_f)
    # f32 output doubles as the reduction accumulator -> no scratch (VMEM headroom).
    need_scratch = jnp.dtype(out_dtype) != jnp.dtype(jnp.float32)
    scratch_shapes = [pltpu.VMEM((tm, D), jnp.float32)] if need_scratch else []

    out = pl.pallas_call(
        partial(ffn_kernel, eps=eps),
        out_shape=jax.ShapeDtypeStruct((M_pad, D), out_dtype),
        grid=grid,
        in_specs=[
            pl.BlockSpec((tm, D), lambda i, f: (i, 0)),    # x row tile (resident over f)
            pl.BlockSpec((D, tf), lambda i, f: (0, f)),    # W1 column block
            pl.BlockSpec((tf, D), lambda i, f: (f, 0)),    # W2 row block
            pl.BlockSpec((1, D), lambda i, f: (0, 0)),     # LN gamma
            pl.BlockSpec((1, D), lambda i, f: (0, 0)),     # LN beta
        ],
        out_specs=pl.BlockSpec((tm, D), lambda i, f: (i, 0)),
        scratch_shapes=scratch_shapes,
        compiler_params=pltpu.CompilerParams(
            dimension_semantics=("parallel", "arbitrary"),
            vmem_limit_bytes=vmem_limit,
        ),
    )(xm, w1, w2, gamma, beta)

    return out[:M].reshape(B, S, D)


def ref_ffn(x, params, eps=1e-5):
    """Pure-JAX reference mirroring the PyTorch forward."""
    h = jnp.maximum(x @ params["w1"], 0.0)
    z = x + h @ params["w2"]
    mu = z.mean(-1, keepdims=True)
    var = ((z - mu) ** 2).mean(-1, keepdims=True)
    return (z - mu) / jnp.sqrt(var + eps) * params["g"][0] + params["b"][0]


def init_params(key, d_model, d_ff):
    k1, k2, k3, k4 = jax.random.split(key, 4)
    return {
        "w1": jax.random.normal(k1, (d_model, d_ff), jnp.float32) / math.sqrt(d_model),
        "w2": jax.random.normal(k2, (d_ff, d_model), jnp.float32) / math.sqrt(d_ff),
        "g": 1.0 + 0.1 * jax.random.normal(k3, (1, d_model), jnp.float32),
        "b": 0.1 * jax.random.normal(k4, (1, d_model), jnp.float32),
    }


if __name__ == "__main__":
    key = jax.random.PRNGKey(0)

    # --- small demo shapes consistent with the module ---
    B, S, D, D_FF = 2, 8, 32, 64
    k_x, k_p, k_x2, k_p2 = jax.random.split(key, 4)
    x = jax.random.normal(k_x, (B, S, D), jnp.float32)
    params = init_params(k_p, D, D_FF)
    ref = ref_ffn(x, params)

    # default path: bf16 matmuls, f32 accumulation / residual / LayerNorm
    out_bf16 = jax.block_until_ready(positionwise_ffn(x, params))
    assert out_bf16.shape == (B, S, D)
    assert jnp.allclose(out_bf16, ref, atol=5e-2, rtol=5e-2)

    # f32 compute path -> tight tolerance
    out_f32 = jax.block_until_ready(positionwise_ffn(x, params, compute_dtype=jnp.float32))
    assert jnp.allclose(out_f32, ref, atol=1e-4, rtol=1e-4)

    # --- exercise multi-row-tile grid + row padding (weights resident) ---
    B2, S2, D2, D_FF2 = 2, 200, 32, 640
    x2 = jax.random.normal(k_x2, (B2, S2, D2), jnp.float32)
    params2 = init_params(k_p2, D2, D_FF2)
    ref2 = ref_ffn(x2, params2)
    out2 = jax.block_until_ready(positionwise_ffn(x2, params2, compute_dtype=jnp.float32))
    assert out2.shape == (B2, S2, D2)
    assert jnp.allclose(out2, ref2, atol=1e-4, rtol=1e-4)

    # --- force the d_ff reduction path (tiny artificial VMEM budget) ---
    out3 = jax.block_until_ready(
        positionwise_ffn(x2, params2, compute_dtype=jnp.float32,
                         vmem_budget_bytes=600 * 1024))
    assert jnp.allclose(out3, ref2, atol=1e-4, rtol=1e-4)

    print("KERNEL_OK")
</pallas_src>

<mosaic_0001>
module attributes {stable_mosaic.version = 11 : i64} {
  func.func @ffn_kernel(%arg0: i32, %arg1: i32, %arg2: memref<16x32xf32, #tpu.memory_space<vmem>>, %arg3: memref<32x64xbf16, #tpu.memory_space<vmem>>, %arg4: memref<64x32xbf16, #tpu.memory_space<vmem>>, %arg5: memref<1x32xf32, #tpu.memory_space<vmem>>, %arg6: memref<1x32xf32, #tpu.memory_space<vmem>>, %arg7: memref<16x32xf32, #tpu.memory_space<vmem>>) attributes {dimension_semantics = [#tpu.dimension_semantics<parallel>, #tpu.dimension_semantics<arbitrary>], iteration_bounds = array<i64: 1, 1>, scalar_prefetch = 0 : i64, scratch_operands = 0 : i64, tpu.core_type = #tpu.core_type<tc>, window_params = [{transform_indices = @transform_0, window_bounds = array<i64: 16, 32>}, {transform_indices = @transform_1, window_bounds = array<i64: 32, 64>}, {transform_indices = @transform_2, window_bounds = array<i64: 64, 32>}, {pipeline_mode = #tpu.pipeline_mode<synchronous>, transform_indices = @transform_3, window_bounds = array<i64: 1, 32>}, {pipeline_mode = #tpu.pipeline_mode<synchronous>, transform_indices = @transform_4, window_bounds = array<i64: 1, 32>}, {transform_indices = @transform_5, window_bounds = array<i64: 16, 32>}]} {
    %c0_i32 = arith.constant 0 : i32
    %0 = arith.cmpi eq, %arg1, %c0_i32 : i32
    %1 = arith.extui %0 : i1 to i32
    %c0_i32_0 = arith.constant 0 : i32
    %2 = arith.cmpi ne, %1, %c0_i32_0 : i32
    scf.if %2 {
      %cst_14 = arith.constant 0.000000e+00 : f32
      %18 = vector.broadcast %cst_14 : f32 to vector<16x32xf32>
      %c0_15 = arith.constant 0 : index
      %c0_16 = arith.constant 0 : index
      %19 = vector.load %arg7[%c0_15, %c0_16] : memref<16x32xf32, #tpu.memory_space<vmem>>, vector<16x32xf32>
      tpu.vector_store %arg7[%c0_15, %c0_16], %18 {strides = array<i32>} : memref<16x32xf32, #tpu.memory_space<vmem>>, vector<16x32xf32>,
    } else {
    }
    %c0 = arith.constant 0 : index
    %c0_1 = arith.constant 0 : index
    %3 = vector.load %arg2[%c0, %c0_1] : memref<16x32xf32, #tpu.memory_space<vmem>>, vector<16x32xf32>
    %4 = arith.truncf %3 : vector<16x32xf32> to vector<16x32xbf16>
    %c0_2 = arith.constant 0 : index
    %c0_3 = arith.constant 0 : index
    %5 = vector.load %arg3[%c0_2, %c0_3] : memref<32x64xbf16, #tpu.memory_space<vmem>>, vector<32x64xbf16>
    %cst = arith.constant dense<0.000000e+00> : vector<16x64xf32>
    %6 = tpu.matmul %4, %5, %cst {dimension_numbers = #tpu.dot_dimension_numbers<[1], [0], [0], [1], [0, 0, 1, 1], [], []>} : vector<16x32xbf16>, vector<32x64xbf16>, vector<16x64xf32> -> vector<16x64xf32>
    %cst_4 = arith.constant 0.000000e+00 : f32
    %7 = vector.broadcast %cst_4 : f32 to vector<16x64xf32>
    %8 = arith.maximumf %6, %7 : vector<16x64xf32>
    %9 = arith.truncf %8 : vector<16x64xf32> to vector<16x64xbf16>
    %c0_5 = arith.constant 0 : index
    %c0_6 = arith.constant 0 : index
    %10 = vector.load %arg7[%c0_5, %c0_6] : memref<16x32xf32, #tpu.memory_space<vmem>>, vector<16x32xf32>
    %c0_7 = arith.constant 0 : index
    %c0_8 = arith.constant 0 : index
    %11 = vector.load %arg4[%c0_7, %c0_8] : memref<64x32xbf16, #tpu.memory_space<vmem>>, vector<64x32xbf16>
    %cst_9 = arith.constant dense<0.000000e+00> : vector<16x32xf32>
    %12 = tpu.matmul %9, %11, %cst_9 {dimension_numbers = #tpu.dot_dimension_numbers<[1], [0], [0], [1], [0, 0, 1, 1], [], []>} : vector<16x64xbf16>, vector<64x32xbf16>, vector<16x32xf32> -> vector<16x32xf32>
    %13 = arith.addf %10, %12 : vector<16x32xf32>
    %c0_10 = arith.constant 0 : index
    %c0_11 = arith.constant 0 : index
    %14 = vector.load %arg7[%c0_10, %c0_11] : memref<16x32xf32, #tpu.memory_space<vmem>>, vector<16x32xf32>
    tpu.vector_store %arg7[%c0_10, %c0_11], %13 {strides = array<i32>} : memref<16x32xf32, #tpu.memory_space<vmem>>, vector<16x32xf32>,
    %c0_i32_12 = arith.constant 0 : i32
    %15 = arith.cmpi eq, %arg1, %c0_i32_12 : i32
    %16 = arith.extui %15 : i1 to i32
    %c0_i32_13 = arith.constant 0 : i32
    %17 = arith.cmpi ne, %16, %c0_i32_13 : i32
    scf.if %17 {
      %c0_14 = arith.constant 0 : index
      %c0_15 = arith.constant 0 : index
      %18 = vector.load %arg7[%c0_14, %c0_15] : memref<16x32xf32, #tpu.memory_space<vmem>>, vector<16x32xf32>
      %19 = arith.addf %3, %18 : vector<16x32xf32>
      %cst_16 = arith.constant dense<0.000000e+00> : vector<16xf32>
      %20 = vector.multi_reduction <add>, %19, %cst_16 [1] : vector<16x32xf32> to vector<16xf32>
      %21 = vector.shape_cast %20 : vector<16xf32> to vector<16x1xf32>
      %22 = arith.mulf %19, %19 : vector<16x32xf32>
      %cst_17 = arith.constant dense<0.000000e+00> : vector<16xf32>
      %23 = vector.multi_reduction <add>, %22, %cst_17 [1] : vector<16x32xf32> to vector<16xf32>
      %24 = vector.shape_cast %23 : vector<16xf32> to vector<16x1xf32>
      %cst_18 = arith.constant 3.125000e-02 : f32
      %25 = vector.broadcast %cst_18 : f32 to vector<16x1xf32>
      %26 = arith.mulf %21, %25 : vector<16x1xf32>
      %cst_19 = arith.constant 3.125000e-02 : f32
      %27 = vector.broadcast %cst_19 : f32 to vector<16x1xf32>
      %28 = arith.mulf %24, %27 : vector<16x1xf32>
      %29 = arith.mulf %26, %26 : vector<16x1xf32>
      %30 = arith.subf %28, %29 : vector<16x1xf32>
      %cst_20 = arith.constant 0.000000e+00 : f32
      %31 = vector.broadcast %cst_20 : f32 to vector<16x1xf32>
      %32 = arith.maximumf %30, %31 : vector<16x1xf32>
      %cst_21 = arith.constant 9.99999974E-6 : f32
      %33 = vector.broadcast %cst_21 : f32 to vector<16x1xf32>
      %34 = arith.addf %32, %33 : vector<16x1xf32>
      %35 = math.rsqrt %34 : vector<16x1xf32>
      %36 = vector.broadcast %26 : vector<16x1xf32> to vector<16x32xf32>
      %37 = arith.subf %19, %36 : vector<16x32xf32>
      %38 = vector.broadcast %35 : vector<16x1xf32> to vector<16x32xf32>
      %39 = arith.mulf %37, %38 : vector<16x32xf32>
      %c0_22 = arith.constant 0 : index
      %c0_23 = arith.constant 0 : index
      %40 = vector.load %arg5[%c0_22, %c0_23] : memref<1x32xf32, #tpu.memory_space<vmem>>, vector<1x32xf32>
      %41 = vector.shape_cast %40 : vector<1x32xf32> to vector<32xf32>
      %42 = vector.shape_cast %41 : vector<32xf32> to vector<1x32xf32>
      %43 = vector.broadcast %42 : vector<1x32xf32> to vector<16x32xf32>
      %44 = arith.mulf %39, %43 : vector<16x32xf32>
      %c0_24 = arith.constant 0 : index
      %c0_25 = arith.constant 0 : index
      %45 = vector.load %arg6[%c0_24, %c0_25] : memref<1x32xf32, #tpu.memory_space<vmem>>, vector<1x32xf32>
      %46 = vector.shape_cast %45 : vector<1x32xf32> to vector<32xf32>
      %47 = vector.shape_cast %46 : vector<32xf32> to vector<1x32xf32>
      %48 = vector.broadcast %47 : vector<1x32xf32> to vector<16x32xf32>
      %49 = arith.addf %44, %48 : vector<16x32xf32>
      %c0_26 = arith.constant 0 : index
      %c0_27 = arith.constant 0 : index
      %50 = vector.load %arg7[%c0_26, %c0_27] : memref<16x32xf32, #tpu.memory_space<vmem>>, vector<16x32xf32>
      tpu.vector_store %arg7[%c0_26, %c0_27], %49 {strides = array<i32>} : memref<16x32xf32, #tpu.memory_space<vmem>>, vector<16x32xf32>,
    } else {
    }
    return
  }
  func.func @transform_0(%arg0: i32, %arg1: i32) -> (i32, i32) {
    %c0_i32 = arith.constant 0 : i32
    %c0_i32_0 = arith.constant 0 : i32
    return %arg0, %c0_i32 : i32, i32
  }
  func.func @transform_1(%arg0: i32, %arg1: i32) -> (i32, i32) {
    %c0_i32 = arith.constant 0 : i32
    %c0_i32_0 = arith.constant 0 : i32
    return %c0_i32, %arg1 : i32, i32
  }
  func.func @transform_2(%arg0: i32, %arg1: i32) -> (i32, i32) {
    %c0_i32 = arith.constant 0 : i32
    %c0_i32_0 = arith.constant 0 : i32
    return %arg1, %c0_i32 : i32, i32
  }
  func.func @transform_3(%arg0: i32, %arg1: i32) -> (i32, i32) {
    %c0_i32 = arith.constant 0 : i32
    %c0_i32_0 = arith.constant 0 : i32
    %c0_i32_1 = arith.constant 0 : i32
    return %c0_i32, %c0_i32_0 : i32, i32
  }
  func.func @transform_4(%arg0: i32, %arg1: i32) -> (i32, i32) {
    %c0_i32 = arith.constant 0 : i32
    %c0_i32_0 = arith.constant 0 : i32
    %c0_i32_1 = arith.constant 0 : i32
    return %c0_i32, %c0_i32_0 : i32, i32
  }
  func.func @transform_5(%arg0: i32, %arg1: i32) -> (i32, i32) {
    %c0_i32 = arith.constant 0 : i32
    %c0_i32_0 = arith.constant 0 : i32
    return %arg0, %c0_i32 : i32, i32
  }
}

</mosaic_0001>

<bundles_post_ra>
// kernel: tpu_custom_call.1
= control target key start
LH: loop header
LB: loop body
LE: loop exit
PB: predicated region body
PF: predicated region fallthrough
CT: control target
= control target key end

     0   :  { %v329_v1 = vmov 0.0   ;;  %vm330_vm0 = vmmov 0   ;;  %vm26_vm1 = vcmask 261120   ;;  %s408_s0 = inlined_call_operand.vmem [shape: f32[16,32], index: 0, kind: input, shape index: {}]   ;;  %s409_s1 = inlined_call_operand.vmem [shape: bf16[32,64], index: 1, kind: input, shape index: {}]   ;;  %s410_s2 = inlined_call_operand.vmem [shape: bf16[64,32], index: 2, kind: input, shape index: {}]   ;;  %s411_s3 = inlined_call_operand.vmem [shape: f32[1,32], index: 3, kind: input, shape index: {}]   ;;  %s412_s4 = inlined_call_operand.vmem [shape: f32[1,32], index: 4, kind: input, shape index: {}]   ;;  %s413_s5 = inlined_call_operand.hbm [shape: f32[16,32], index: 5, kind: output, shape index: {}]  }
   0x1   :  { %v297_v0 = vld [vmem:[%s409_s1 + $0x8] sm:$0xff]   ;;  %272 = vmatprep.subr.bf16.mxu0 %v329_v1  ;;  %v298_v2 = vld [vmem:[%s409_s1] sm:$0xff]   ;;  %280 = vmatprep.subr.bf16.mxu1 %v329_v1  ;;  %27 = vst.msk [vmem:[#allocation2] sm:$0xff] %vm26_vm1, %v329_v1  ;;  %28 = vst.msk [vmem:[#allocation2 + $0x8] sm:$0xff] %vm26_vm1, %v329_v1 }
   0x2   :  { %273 = vmatpush3.bf16.msra.mxu0 %v297_v0  ;;  %276 = vmatprep.mubr.msk.bf16.mxu0 %vm330_vm0, %v329_v1  ;;  %v29_v3 = vld [vmem:[%s408_s0] sm:$0xff]  ;;  %v30_v4 = vld [vmem:[%s408_s0 + $0x8] sm:$0xff]  ;;  %v299_v5 = vld [vmem:[%s410_s2 + $0x18] sm:$0xff]  }
   0x3   :  { %274 = vmatprep.subr.bf16.mxu0 %v329_v1  ;;  %288 = vmatprep.mubr.msk.bf16.mxu1 %vm330_vm0, %v329_v1  ;;  %v300_v6 = vld [vmem:[%s410_s2 + $0x10] sm:$0xff]   ;;  %v31_v7 = vpack.c.bf16 %v30_v4, %v29_v3 }
   0x4   :  { %281 = vmatpush3.bf16.msra.mxu1 %v299_v5 }
   0x5   :  { %282 = vmatprep.subr.bf16.mxu1 %v329_v1 }
   0x6   :  { %275 = vmatpush3.bf16.msra.mxu0 %v298_v2 }
   0x7   :  { %10 = vsyncpa [#allocation3], 0  ;;  %v301_v8 = vld [vmem:[%s410_s2 + $0x8] sm:$0xff]   ;;  %v302_v9 = vld [vmem:[%s410_s2] sm:$0xff]   ;;  %vm130_vm2 = vcmask 523264   ;;  %s331_s10 = smov [#allocation2]  }
   0x8   :  { %283 = vmatpush3.bf16.msra.mxu1 %v300_v6  ;;  %v96_v17 = vld [vmem:[#allocation2] sm:$0xff]  ;;  %v97_v21 = vld [vmem:[#allocation2 + $0x8] sm:$0xff]  ;;  %s243_s11 = sshll.u32 %s331_s10, 4  ;;  %s244_s11 = int_to_ptr.vmem [resolvable:$true] %s243_s11 }
   0x9   :  { %277 = vmatmul.mubr.msk.bf16.vlgmr.msra.gmra.mxu0 %vm26_vm1, %v31_v7  ;;  %284 = vmatprep.subr.bf16.mxu1 %v329_v1  ;;  %v262_v53 = vld [vmem:[%s411_s3] ss:$0 sm:$0xff]  ;;  %s307_s3 = scalar_lea.vmem %s244_s11, 256  ;;  %p312_p1 = scmp.lt.s32.totalorder %s244_s11, %s244_s11 }
   0xa   :  { %v263_v55 = vld [vmem:[%s412_s4] ss:$0 sm:$0xff]  ;;  %p308_p0 = scmp.ne.s32.totalorder %s244_s11, %s307_s3  ;;  %p313_p2 = scmp.lt.s32.totalorder %s307_s3, %s307_s3 }
   0xc   :  { %285 = vmatpush3.bf16.msra.mxu1 %v301_v8  ;;  %p314_p3 = por %p313_p2, %p312_p1 }
   0xd   :  { %286 = vmatprep.subr.bf16.mxu1 %v329_v1 }
   0xe   :  { %p315_p4 = pnand %p314_p3, %p308_p0 }
  0x10   :  { %287 = vmatpush3.bf16.msra.mxu1 %v302_v9 }
  0xc9   :  { %v86_v10 = vpop.f32.mrf.mxu0 }
  0xca   :  { %v93_v13 = vmax.f32 %v86_v10, 0.0 }
  0xcb   :  { %v278_v11 = vpop.f32.mrf.mxu0 }
  0xcd   :  { %v89_v12 = vpop.f32.mrf.mxu0 }
  0xce   :  { %v94_v14 = vmax.f32 %v89_v12, 0.0 }
  0xcf   :  { %v279_v15 = vpop.f32.mrf.mxu0 }
  0xd0   :  { %v95_v16 = vpack.c.bf16 %v94_v14, %v93_v13 }
  0xd2   :  { %289 = vmatmul.mubr.msk.bf16.vlgmr.msra.gmra.mxu1 %vm130_vm2, %v95_v16 }
 0x192   :  { %v168_v18 = vpop.f32.mrf.mxu1 }
 0x193   :  { %v175_v19 = vadd.f32 %v168_v18, %v96_v17 }
 0x194   :  { %v290_v20 = vpop.f32.mrf.mxu1 }
 0x195   :  { %177 = vst.msk [vmem:[#allocation2] sm:$0xff] %vm26_vm1, %v175_v19 }
 0x196   :  { %v171_v22 = vpop.f32.mrf.mxu1 }
 0x197   :  { %v176_v23 = vadd.f32 %v171_v22, %v97_v21 }
 0x198   :  { %v291_v24 = vpop.f32.mrf.mxu1 }
 0x199   :  { %178 = vst.msk [vmem:[#allocation2 + $0x8] sm:$0xff] %vm26_vm1, %v176_v23 }
 0x19c   :  { %v182_v25 = vld [vmem:[#allocation2] sm:$0xff] }
 0x19d   :  { %v184_v26 = vadd.f32 %v182_v25, %v29_v3 }
 0x19f   :  { %v186_v27 = vsel %vm26_vm1, %v184_v26, 0.0  ;;  %v192_v28 = vmul.f32 %v184_v26, %v184_v26 }
 0x1a0   :  { %187 = vadd.xlane.f32.xlu0 %v186_v27  ;;  %v183_v29 = vld [vmem:[#allocation2 + $0x8] sm:$0xff] }
 0x1a1   :  { %v194_v30 = vsel %vm26_vm1, %v192_v28, 0.0  ;;  %v185_v31 = vadd.f32 %v183_v29, %v30_v4 }
 0x1a2   :  { %195 = vadd.xlane.f32.xlu1 %v194_v30 }
 0x1a3   :  { %v189_v32 = vsel %vm26_vm1, %v185_v31, 0.0  ;;  %v193_v33 = vmul.f32 %v185_v31, %v185_v31 }
 0x1a4   :  { %190 = vadd.xlane.f32.xlu0 %v189_v32 }
 0x1a5   :  { %v197_v34 = vsel %vm26_vm1, %v193_v33, 0.0 }
 0x1a6   :  { %198 = vadd.xlane.f32.xlu1 %v197_v34 }
 0x229   :  { %v188_v35 = vpop.xlane.xlu0 %187 }
 0x22a   :  { %v200_v36 = vmul.f32 0.03125, %v188_v35 }
 0x22b   :  { %v196_v37 = vpop.xlane.xlu1 %195 }
 0x22c   :  { %v204_v38 = vmul.f32 %v200_v36, %v200_v36  ;;  %v202_v39 = vmul.f32 0.03125, %v196_v37  ;;  %v214_v51 = vsub.f32 %v184_v26, %v200_v36 }
 0x22d   :  { %v191_v40 = vpop.xlane.xlu0 %190 }
 0x22e   :  { %v206_v41 = vsub.f32 %v202_v39, %v204_v38  ;;  %v201_v42 = vmul.f32 0.03125, %v191_v40 }
 0x22f   :  { %v199_v43 = vpop.xlane.xlu1 %198 }
 0x230   :  { %v208_v44 = vmax.f32 %v206_v41, 0.0  ;;  %v205_v45 = vmul.f32 %v201_v42, %v201_v42  ;;  %v203_v46 = vmul.f32 0.03125, %v199_v43  ;;  %v215_v56 = vsub.f32 %v185_v31, %v201_v42 }
 0x232   :  { %v210_v47 = vadd.f32 1e-05, %v208_v44  ;;  %v207_v48 = vsub.f32 %v203_v46, %v205_v45 }
 0x234   :  { %303 = vrsqrt.f32 %v210_v47  ;;  %v209_v49 = vmax.f32 %v207_v48, 0.0 }
 0x236   :  { %v211_v50 = vadd.f32 1e-05, %v209_v49 }
 0x238   :  { %305 = vrsqrt.f32 %v211_v50 }
 0x241   :  { %v304_v52 = vpop.eup %303 }
 0x242   :  { %v216_v54 = vmul.f32 %v304_v52, %v214_v51 }
 0x244   :  { %v225_v57 = vmul.f32 %v262_v53, %v216_v54 }
 0x245   :  { %v306_v58 = vpop.eup %305 }
 0x246   :  { %v217_v59 = vmul.f32 %v306_v58, %v215_v56  ;;  %v234_v60 = vadd.f32 %v263_v55, %v225_v57 }
 0x248   :  { %v226_v61 = vmul.f32 %v262_v53, %v217_v59  ;;  %236 = vst.msk [vmem:[#allocation2] sm:$0xff] %vm26_vm1, %v234_v60 }
 0x24a   :  { %v235_v62 = vadd.f32 %v263_v55, %v226_v61 }
 0x24c   :  { %237 = vst.msk [vmem:[#allocation2 + $0x8] sm:$0xff] %vm26_vm1, %v235_v62 }
 0x24d   :  { %318 = shalt.err (!%p315_p4)
}
 0x24e   :  { %s332_s4 = smov 128   ;;  %s333_s12 = smov 8  }
 0x24f   :  { %249 = dma.vmem_to_hbm [thread:$0]  %s244_s11, 256, %s413_s5, [#allocation3], %s332_s4, %s332_s4, %s333_s12  }
 0x250   :  { %327 = dma.done.wait [#allocation3], 256  }
 0x251   :  { %328 = vsyncadd [#allocation3], 4294967040 }
 0x252   :  { %253 = vsyncpa [#allocation3], 1 }

</bundles_post_ra>
